<compile_context>
chip_gen: v5e
topology: v5e:2x2
jax: 0.10.0
libtpu: 0.0.40
codegen_flags: <defaults>
</compile_context>

<pallas_src>
import functools

import jax
import jax.numpy as jnp
from jax import lax
from jax.experimental import pallas as pl
from jax.experimental.pallas import tpu as pltpu

D_IN = 3
D_OUT = 2
SEQ = 8


def _round_up(n, m):
    return ((n + m - 1) // m) * m


# ---------------------------------------------------------------------------
# Kernel 1: fused Q/K/V projection.  One MXU matmul per row tile against the
# concatenated weight; outputs stored in bf16 so the flash kernel's operands
# are MXU-native and per-step HBM bytes are halved vs. f32.
# ---------------------------------------------------------------------------
def _qkv_proj_kernel(x_ref, w_ref, q_ref, k_ref, v_ref, *, d_pad):
    qkv = jnp.dot(x_ref[...], w_ref[...], preferred_element_type=jnp.float32)
    q_ref[...] = qkv[:, :d_pad].astype(q_ref.dtype)
    k_ref[...] = qkv[:, d_pad:2 * d_pad].astype(k_ref.dtype)
    v_ref[...] = qkv[:, 2 * d_pad:].astype(v_ref.dtype)


# ---------------------------------------------------------------------------
# Kernel 2: flash-style attention over precomputed bf16 Q/K/V.  Online-softmax
# state (m, l) lives in f32 VMEM scratch; the f32 output block is resident
# across the KV ("arbitrary") grid axis and accumulates P @ V.
# ---------------------------------------------------------------------------
def _flash_attn_kernel(q_ref, k_ref, v_ref, o_ref, m_sc, l_sc, *,
                       block_k, seq_len, mask_kv):
    ki = pl.program_id(1)

    @pl.when(ki == 0)
    def _init():
        m_sc[...] = jnp.full_like(m_sc, -jnp.inf)
        l_sc[...] = jnp.zeros_like(l_sc)
        o_ref[...] = jnp.zeros_like(o_ref)

    # scores = Q @ K^T : contract the feature dim directly (no keys.T / XLU
    # transpose); bf16 operands, f32 accumulation on the MXU.  The softmax
    # scale is already folded into W_q.
    s = lax.dot_general(q_ref[...], k_ref[...], (((1,), (1,)), ((), ())),
                        preferred_element_type=jnp.float32)  # [tq, tk] f32

    if mask_kv:
        # Mask zero-padded key rows (only present when T was padded).  With
        # this tiling every KV tile that exists holds >= 1 valid key, so m_new
        # below stays finite (no exp(-inf - (-inf)) NaN hazard).
        key_idx = ki * block_k + lax.broadcasted_iota(jnp.int32, s.shape, 1)
        s = jnp.where(key_idx < seq_len, s, -jnp.inf)

    # Online softmax update — kept in f32 (v5e has no bf16 VPU/EUP).
    m_prev = m_sc[...]
    m_new = jnp.maximum(m_prev, jnp.max(s, axis=-1, keepdims=True))
    alpha = jnp.exp(m_prev - m_new)
    p = jnp.exp(s - m_new)

    l_sc[...] = alpha * l_sc[...] + jnp.sum(p, axis=-1, keepdims=True)
    o_ref[...] = alpha * o_ref[...] + jnp.dot(
        p.astype(v_ref.dtype), v_ref[...], preferred_element_type=jnp.float32)
    m_sc[...] = m_new

    @pl.when(ki == pl.num_programs(1) - 1)
    def _finalize():
        o_ref[...] = o_ref[...] * pl.reciprocal(l_sc[...], approx=True)


def self_attention_v1(x, w_query, w_key, w_value, *, block_q=512, block_k=512):
    """context = softmax((x Wq)(x Wk)^T / sqrt(d_out)) (x Wv), matching SelfAttention_v1."""
    T, d_in = x.shape
    d_out = w_query.shape[1]

    # Lane/sublane aligned (padded) sizes.
    d_in_p = _round_up(d_in, 128)
    d_pad = _round_up(d_out, 128)

    t8 = _round_up(T, 8)
    tile_q = min(block_q, t8)
    tile_k = min(block_k, t8)
    t_pad = _round_up(T, max(tile_q, tile_k))
    # Keep >= 2 programs on the "parallel" Q axis when the problem is big
    # enough, so both TensorCores get work on v7x megacore.
    if t_pad // tile_q < 2 and t_pad >= 512 and (t_pad // 2) % 8 == 0:
        tile_q = t_pad // 2
    assert t_pad % tile_q == 0 and t_pad % tile_k == 0

    # Fold 1/sqrt(d_k) into W_q at trace time (d_k = keys.shape[-1] = d_out).
    scale = 1.0 / (d_out ** 0.5)

    def pad_w(w):
        return jnp.zeros((d_in_p, d_pad), jnp.float32).at[:d_in, :d_out].set(
            w.astype(jnp.float32))

    # Fused projection weight [d_in_p, 3*d_pad] -> [Wq*scale | Wk | Wv], bf16.
    w_fused = jnp.concatenate(
        [pad_w(w_query) * scale, pad_w(w_key), pad_w(w_value)],
        axis=1).astype(jnp.bfloat16)

    x_p = jnp.zeros((t_pad, d_in_p), jnp.float32).at[:T, :d_in].set(
        x.astype(jnp.float32)).astype(jnp.bfloat16)

    # ---- pass 1: Q/K/V projection (computed once per row, not per Q tile) ----
    proj_kernel = functools.partial(_qkv_proj_kernel, d_pad=d_pad)
    q, k, v = pl.pallas_call(
        proj_kernel,
        out_shape=tuple(
            jax.ShapeDtypeStruct((t_pad, d_pad), jnp.bfloat16) for _ in range(3)),
        grid_spec=pltpu.PrefetchScalarGridSpec(
            num_scalar_prefetch=0,
            grid=(t_pad // tile_q,),
            in_specs=[
                pl.BlockSpec((tile_q, d_in_p), lambda i: (i, 0)),       # x rows
                pl.BlockSpec((d_in_p, 3 * d_pad), lambda i: (0, 0)),    # fused W
            ],
            out_specs=(
                pl.BlockSpec((tile_q, d_pad), lambda i: (i, 0)),        # Q
                pl.BlockSpec((tile_q, d_pad), lambda i: (i, 0)),        # K
                pl.BlockSpec((tile_q, d_pad), lambda i: (i, 0)),        # V
            )),
        compiler_params=pltpu.CompilerParams(
            dimension_semantics=("parallel",)),
    )(x_p, w_fused)

    # ---- pass 2: flash attention over Q/K/V tiles ----
    grid = (t_pad // tile_q, t_pad // tile_k)
    kernel = functools.partial(
        _flash_attn_kernel, block_k=tile_k, seq_len=T, mask_kv=(t_pad != T))

    out = pl.pallas_call(
        kernel,
        out_shape=jax.ShapeDtypeStruct((t_pad, d_pad), jnp.float32),
        grid_spec=pltpu.PrefetchScalarGridSpec(
            num_scalar_prefetch=0,
            grid=grid,
            in_specs=[
                pl.BlockSpec((tile_q, d_pad), lambda qi, ki: (qi, 0)),  # Q
                pl.BlockSpec((tile_k, d_pad), lambda qi, ki: (ki, 0)),  # K
                pl.BlockSpec((tile_k, d_pad), lambda qi, ki: (ki, 0)),  # V
            ],
            out_specs=pl.BlockSpec((tile_q, d_pad), lambda qi, ki: (qi, 0)),
            scratch_shapes=[
                pltpu.VMEM((tile_q, 1), jnp.float32),   # running max m
                pltpu.VMEM((tile_q, 1), jnp.float32),   # running denom l
            ]),
        compiler_params=pltpu.CompilerParams(
            dimension_semantics=("parallel", "arbitrary")),
    )(q, k, v)

    return out[:T, :d_out]


def self_attention_ref(x, w_query, w_key, w_value):
    keys = x @ w_key
    queries = x @ w_query
    values = x @ w_value
    scores = queries @ keys.T
    weights = jax.nn.softmax(scores / keys.shape[-1] ** 0.5, axis=-1)
    return weights @ values


if __name__ == "__main__":
    key = jax.random.PRNGKey(0)
    kx, kq, kk, kv = jax.random.split(key, 4)

    # Mirror torch.rand(d_in, d_out) init — uniform [0, 1).
    x = jax.random.uniform(kx, (SEQ, D_IN), dtype=jnp.float32)
    w_query = jax.random.uniform(kq, (D_IN, D_OUT), dtype=jnp.float32)
    w_key = jax.random.uniform(kk, (D_IN, D_OUT), dtype=jnp.float32)
    w_value = jax.random.uniform(kv, (D_IN, D_OUT), dtype=jnp.float32)

    out = jax.block_until_ready(self_attention_v1(x, w_query, w_key, w_value))
    ref = self_attention_ref(x, w_query, w_key, w_value)
    assert out.shape == (SEQ, D_OUT)
    # bf16 MXU operands -> ~0.4% relative error budget.
    assert jnp.allclose(out, ref, atol=2e-2, rtol=2e-2), "mismatch vs JAX reference (toy size)"

    # Exercise the tiled path (grid > 1, padded-key masking) at a larger T.
    k2 = jax.random.PRNGKey(1)
    kx2, kq2, kk2, kv2 = jax.random.split(k2, 4)
    T2, DI2, DO2 = 300, 3, 2
    x2 = jax.random.uniform(kx2, (T2, DI2), dtype=jnp.float32)
    wq2 = jax.random.uniform(kq2, (DI2, DO2), dtype=jnp.float32)
    wk2 = jax.random.uniform(kk2, (DI2, DO2), dtype=jnp.float32)
    wv2 = jax.random.uniform(kv2, (DI2, DO2), dtype=jnp.float32)
    out2 = jax.block_until_ready(
        self_attention_v1(x2, wq2, wk2, wv2, block_q=128, block_k=128))
    ref2 = self_attention_ref(x2, wq2, wk2, wv2)
    assert out2.shape == (T2, DO2)
    assert jnp.allclose(out2, ref2, atol=2e-2, rtol=2e-2), "mismatch vs JAX reference (tiled)"

    print("KERNEL_OK")
</pallas_src>

<mosaic_0001>
module attributes {stable_mosaic.version = 11 : i64} {
  func.func @_qkv_proj_kernel(%arg0: i32, %arg1: memref<8x128xbf16, #tpu.memory_space<vmem>>, %arg2: memref<128x384xbf16, #tpu.memory_space<vmem>>, %arg3: memref<8x128xbf16, #tpu.memory_space<vmem>>, %arg4: memref<8x128xbf16, #tpu.memory_space<vmem>>, %arg5: memref<8x128xbf16, #tpu.memory_space<vmem>>) attributes {dimension_semantics = [#tpu.dimension_semantics<parallel>], iteration_bounds = array<i64: 1>, scalar_prefetch = 0 : i64, scratch_operands = 0 : i64, tpu.core_type = #tpu.core_type<tc>, window_params = [{transform_indices = @transform_0, window_bounds = array<i64: 8, 128>}, {pipeline_mode = #tpu.pipeline_mode<synchronous>, transform_indices = @transform_1, window_bounds = array<i64: 128, 384>}, {transform_indices = @transform_2, window_bounds = array<i64: 8, 128>}, {transform_indices = @transform_3, window_bounds = array<i64: 8, 128>}, {transform_indices = @transform_4, window_bounds = array<i64: 8, 128>}]} {
    %c0 = arith.constant 0 : index
    %c0_0 = arith.constant 0 : index
    %0 = vector.load %arg1[%c0, %c0_0] : memref<8x128xbf16, #tpu.memory_space<vmem>>, vector<8x128xbf16>
    %c0_1 = arith.constant 0 : index
    %c0_2 = arith.constant 0 : index
    %1 = vector.load %arg2[%c0_1, %c0_2] : memref<128x384xbf16, #tpu.memory_space<vmem>>, vector<128x384xbf16>
    %cst = arith.constant dense<0.000000e+00> : vector<8x384xf32>
    %2 = tpu.matmul %0, %1, %cst {dimension_numbers = #tpu.dot_dimension_numbers<[1], [0], [0], [1], [0, 0, 1, 1], [], []>} : vector<8x128xbf16>, vector<128x384xbf16>, vector<8x384xf32> -> vector<8x384xf32>
    %3 = vector.extract_strided_slice %2 {offsets = [0, 0], sizes = [8, 128], strides = [1, 1]} : vector<8x384xf32> to vector<8x128xf32>
    %4 = arith.truncf %3 : vector<8x128xf32> to vector<8x128xbf16>
    %c0_3 = arith.constant 0 : index
    %c0_4 = arith.constant 0 : index
    %5 = vector.load %arg3[%c0_3, %c0_4] : memref<8x128xbf16, #tpu.memory_space<vmem>>, vector<8x128xbf16>
    tpu.vector_store %arg3[%c0_3, %c0_4], %4 {strides = array<i32>} : memref<8x128xbf16, #tpu.memory_space<vmem>>, vector<8x128xbf16>,
    %6 = vector.extract_strided_slice %2 {offsets = [0, 128], sizes = [8, 128], strides = [1, 1]} : vector<8x384xf32> to vector<8x128xf32>
    %7 = arith.truncf %6 : vector<8x128xf32> to vector<8x128xbf16>
    %c0_5 = arith.constant 0 : index
    %c0_6 = arith.constant 0 : index
    %8 = vector.load %arg4[%c0_5, %c0_6] : memref<8x128xbf16, #tpu.memory_space<vmem>>, vector<8x128xbf16>
    tpu.vector_store %arg4[%c0_5, %c0_6], %7 {strides = array<i32>} : memref<8x128xbf16, #tpu.memory_space<vmem>>, vector<8x128xbf16>,
    %9 = vector.extract_strided_slice %2 {offsets = [0, 256], sizes = [8, 128], strides = [1, 1]} : vector<8x384xf32> to vector<8x128xf32>
    %10 = arith.truncf %9 : vector<8x128xf32> to vector<8x128xbf16>
    %c0_7 = arith.constant 0 : index
    %c0_8 = arith.constant 0 : index
    %11 = vector.load %arg5[%c0_7, %c0_8] : memref<8x128xbf16, #tpu.memory_space<vmem>>, vector<8x128xbf16>
    tpu.vector_store %arg5[%c0_7, %c0_8], %10 {strides = array<i32>} : memref<8x128xbf16, #tpu.memory_space<vmem>>, vector<8x128xbf16>,
    return
  }
  func.func @transform_0(%arg0: i32) -> (i32, i32) {
    %c0_i32 = arith.constant 0 : i32
    %c0_i32_0 = arith.constant 0 : i32
    return %arg0, %c0_i32 : i32, i32
  }
  func.func @transform_1(%arg0: i32) -> (i32, i32) {
    %c0_i32 = arith.constant 0 : i32
    %c0_i32_0 = arith.constant 0 : i32
    %c0_i32_1 = arith.constant 0 : i32
    return %c0_i32, %c0_i32_0 : i32, i32
  }
  func.func @transform_2(%arg0: i32) -> (i32, i32) {
    %c0_i32 = arith.constant 0 : i32
    %c0_i32_0 = arith.constant 0 : i32
    return %arg0, %c0_i32 : i32, i32
  }
  func.func @transform_3(%arg0: i32) -> (i32, i32) {
    %c0_i32 = arith.constant 0 : i32
    %c0_i32_0 = arith.constant 0 : i32
    return %arg0, %c0_i32 : i32, i32
  }
  func.func @transform_4(%arg0: i32) -> (i32, i32) {
    %c0_i32 = arith.constant 0 : i32
    %c0_i32_0 = arith.constant 0 : i32
    return %arg0, %c0_i32 : i32, i32
  }
}

</mosaic_0001>

<bundles_post_ra>
// kernel: tpu_custom_call.1
= control target key start
LH: loop header
LB: loop body
LE: loop exit
PB: predicated region body
PF: predicated region fallthrough
CT: control target
= control target key end

     0   :  { %10 = vsyncpa [#allocation3], 0  ;;  %s603_s0 = inlined_call_operand.hbm [shape: bf16[8,128], index: 0, kind: input, shape index: {}]   ;;  %s604_s1 = inlined_call_operand.hbm [shape: bf16[128,384], index: 1, kind: input, shape index: {}]   ;;  %s605_s2 = inlined_call_operand.hbm [shape: bf16[8,128], index: 2, kind: output, shape index: {0}]   ;;  %s606_s3 = inlined_call_operand.hbm [shape: bf16[8,128], index: 3, kind: output, shape index: {1}]   ;;  %s607_s4 = inlined_call_operand.hbm [shape: bf16[8,128], index: 4, kind: output, shape index: {2}]  }
   0x1   :  { %11 = vsyncpa [#allocation6], 0 }
   0x2   :  { %12 = vsyncpa [#allocation4], 0 }
   0x3   :  { %13 = vsyncpa [#allocation9], 0  ;;  %s19_s17 = sshll.u32 %s603_s0, 4  ;;  %s556_s18 = smov [#allocation2]   ;;  %s20_s17 = int_to_ptr.hbm [resolvable:$true] %s19_s17 }
   0x4   :  { %s21_s19 = sshll.u32 %s556_s18, 4  ;;  %s29_s22 = sshll.u32 %s604_s1, 4  ;;  %s22_s19 = int_to_ptr.vmem [resolvable:$true] %s21_s19  ;;  %s30_s22 = int_to_ptr.hbm [resolvable:$true] %s29_s22 }
   0x5   :  { %24 = dma.hbm_to_vmem [thread:$0]  %s20_s17, 64, %s22_s19, [#allocation3]  }
   0x6   :  { %s557_s23 = smov [#allocation5]   ;;  %s558_s25 = smov 192  }
   0x7   :  { %s31_s24 = sshll.u32 %s557_s23, 4  ;;  %s559_s26 = smov 12   ;;  %s32_s24 = int_to_ptr.vmem [resolvable:$true] %s31_s24 }
   0x8   :  { %37 = dma.hbm_to_vmem [thread:$0]  %s30_s22, 3072, %s32_s24, [#allocation6], %s558_s25, %s558_s25, %s559_s26  }
   0x9   :  { %548 = dma.done.wait [#allocation3], 64  }
   0xa   :  { %549 = vsyncadd [#allocation3], 4294967232 }
   0xb   :  { %550 = dma.done.wait [#allocation6], 3072  }
   0xc   :  { %551 = vsyncadd [#allocation6], 4294964224  ;;  %v387_v0 = vld [vmem:[#allocation5 + $0xa8] sm:$0xf]  ;;  %v419_v1 = vld [vmem:[#allocation5 + $0xb0] sm:$0xf0] }
   0xd   :  { %v418_v2 = vld [vmem:[#allocation5 + $0xac] sm:$0xf]  ;;  %v388_v3 = vor.u32 %v419_v1, %v387_v0  ;;  %v389_v4 = vld [vmem:[#allocation5 + $0xb4] sm:$0xf0]  ;;  %v395_v5 = vld [vmem:[#allocation5 + $0xb0] sm:$0xf] }
   0xe   :  { %v420_v6 = vld [vmem:[#allocation5 + $0xb8] sm:$0xf0]  ;;  %v392_v7 = vor.u32 %v418_v2, %v389_v4  ;;  %v375_v9 = vld [vmem:[#allocation5 + $0x90] sm:$0xf]  ;;  %v415_v11 = vld [vmem:[#allocation5 + $0x94] sm:$0xf] }
   0xf   :  { %v396_v8 = vor.u32 %v420_v6, %v395_v5  ;;  %v416_v10 = vld [vmem:[#allocation5 + $0x98] sm:$0xf0]  ;;  %207 = vmatpush.bf16.msra.mxu0 %v388_v3  ;;  %v377_v13 = vld [vmem:[#allocation5 + $0x9c] sm:$0xf0]  ;;  %v383_v14 = vld [vmem:[#allocation5 + $0x98] sm:$0xf] }
  0x10   :  { %v376_v12 = vor.u32 %v416_v10, %v375_v9  ;;  %v417_v15 = vld [vmem:[#allocation5 + $0xa0] sm:$0xf0]  ;;  %220 = vmatpush.bf16.msra.mxu1 %v392_v7  ;;  %v380_v16 = vor.u32 %v415_v11, %v377_v13  ;;  %v363_v18 = vld [vmem:[#allocation5 + $0x78] sm:$0xf]  ;;  %v412_v20 = vld [vmem:[#allocation5 + $0x7c] sm:$0xf] }
  0x11   :  { %233 = vmatpush.bf16.msra.mxu2 %v396_v8  ;;  %v384_v17 = vor.u32 %v417_v15, %v383_v14  ;;  %v413_v19 = vld [vmem:[#allocation5 + $0x80] sm:$0xf0]  ;;  %v365_v21 = vld [vmem:[#allocation5 + $0x84] sm:$0xf0]  ;;  %v371_v22 = vld [vmem:[#allocation5 + $0x80] sm:$0xf] }
  0x12   :  { %v414_v23 = vld [vmem:[#allocation5 + $0x88] sm:$0xf0]  ;;  %v364_v24 = vor.u32 %v413_v19, %v363_v18  ;;  %v368_v25 = vor.u32 %v412_v20, %v365_v21  ;;  %v351_v27 = vld [vmem:[#allocation5 + $0x60] sm:$0xf]  ;;  %v409_v29 = vld [vmem:[#allocation5 + $0x64] sm:$0xf] }
  0x13   :  { %208 = vmatpush.bf16.msra.mxu0 %v376_v12  ;;  %v372_v26 = vor.u32 %v414_v23, %v371_v22  ;;  %v410_v28 = vld [vmem:[#allocation5 + $0x68] sm:$0xf0]  ;;  %v353_v30 = vld [vmem:[#allocation5 + $0x6c] sm:$0xf0]  ;;  %v359_v31 = vld [vmem:[#allocation5 + $0x68] sm:$0xf] }
  0x14   :  { %221 = vmatpush.bf16.msra.mxu1 %v380_v16  ;;  %v411_v32 = vld [vmem:[#allocation5 + $0x70] sm:$0xf0]  ;;  %v352_v33 = vor.u32 %v410_v28, %v351_v27  ;;  %v356_v34 = vor.u32 %v409_v29, %v353_v30  ;;  %v339_v36 = vld [vmem:[#allocation5 + $0x48] sm:$0xf]  ;;  %v406_v38 = vld [vmem:[#allocation5 + $0x4c] sm:$0xf] }
  0x15   :  { %234 = vmatpush.bf16.msra.mxu2 %v384_v17  ;;  %v360_v35 = vor.u32 %v411_v32, %v359_v31  ;;  %v407_v37 = vld [vmem:[#allocation5 + $0x50] sm:$0xf0]  ;;  %v341_v39 = vld [vmem:[#allocation5 + $0x54] sm:$0xf0]  ;;  %v347_v40 = vld [vmem:[#allocation5 + $0x50] sm:$0xf] }
  0x16   :  { %v408_v41 = vld [vmem:[#allocation5 + $0x58] sm:$0xf0]  ;;  %v340_v42 = vor.u32 %v407_v37, %v339_v36  ;;  %v344_v43 = vor.u32 %v406_v38, %v341_v39  ;;  %v327_v45 = vld [vmem:[#allocation5 + $0x30] sm:$0xf]  ;;  %v403_v47 = vld [vmem:[#allocation5 + $0x34] sm:$0xf] }
  0x17   :  { %209 = vmatpush.bf16.msra.mxu0 %v364_v24  ;;  %v348_v44 = vor.u32 %v408_v41, %v347_v40  ;;  %v404_v46 = vld [vmem:[#allocation5 + $0x38] sm:$0xf0]  ;;  %v329_v48 = vld [vmem:[#allocation5 + $0x3c] sm:$0xf0]  ;;  %v335_v49 = vld [vmem:[#allocation5 + $0x38] sm:$0xf] }
  0x18   :  { %222 = vmatpush.bf16.msra.mxu1 %v368_v25  ;;  %v405_v50 = vld [vmem:[#allocation5 + $0x40] sm:$0xf0]  ;;  %v328_v51 = vor.u32 %v404_v46, %v327_v45  ;;  %v332_v52 = vor.u32 %v403_v47, %v329_v48  ;;  %v315_v54 = vld [vmem:[#allocation5 + $0x18] sm:$0xf]  ;;  %v400_v56 = vld [vmem:[#allocation5 + $0x1c] sm:$0xf] }
  0x19   :  { %235 = vmatpush.bf16.msra.mxu2 %v372_v26  ;;  %v336_v53 = vor.u32 %v405_v50, %v335_v49  ;;  %v401_v55 = vld [vmem:[#allocation5 + $0x20] sm:$0xf0]  ;;  %v317_v57 = vld [vmem:[#allocation5 + $0x24] sm:$0xf0]  ;;  %v323_v58 = vld [vmem:[#allocation5 + $0x20] sm:$0xf] }
  0x1a   :  { %v402_v59 = vld [vmem:[#allocation5 + $0x28] sm:$0xf0]  ;;  %v316_v60 = vor.u32 %v401_v55, %v315_v54  ;;  %v320_v61 = vor.u32 %v400_v56, %v317_v57  ;;  %v303_v63 = vld [vmem:[#allocation5] sm:$0xf]  ;;  %v397_v1 = vld [vmem:[#allocation5 + $0x4] sm:$0xf] }
  0x1b   :  { %210 = vmatpush.bf16.msra.mxu0 %v352_v33  ;;  %v324_v62 = vor.u32 %v402_v59, %v323_v58  ;;  %v398_v0 = vld [vmem:[#allocation5 + $0x8] sm:$0xf0]  ;;  %v305_v2 = vld [vmem:[#allocation5 + $0xc] sm:$0xf0]  ;;  %v311_v3 = vld [vmem:[#allocation5 + $0x8] sm:$0xf] }
  0x1c   :  { %223 = vmatpush.bf16.msra.mxu1 %v356_v34  ;;  %v399_v4 = vld [vmem:[#allocation5 + $0x10] sm:$0xf0]  ;;  %v304_v5 = vor.u32 %v398_v0, %v303_v63  ;;  %v308_v6 = vor.u32 %v397_v1, %v305_v2  ;;  %v46_v8 = vld [vmem:[#allocation2] sm:$0xf]  ;;  %s560_s0 = smov [#allocation7]   ;;  %s259_s29 = sshll.u32 %s605_s2, 4  ;;  %s260_s29 = int_to_ptr.hbm [resolvable:$true] %s259_s29 }
  0x1d   :  { %236 = vmatpush.bf16.msra.mxu2 %v360_v35  ;;  %v312_v7 = vor.u32 %v399_v4, %v311_v3  ;;  %s257_s1 = sshll.u32 %s560_s0, 4  ;;  %s561_s30 = smov [#allocation8]   ;;  %s258_s1 = int_to_ptr.vmem [resolvable:$true] %s257_s1 }
  0x1e   :  { %s268_s5 = sshll.u32 %s561_s30, 4  ;;  %s270_s8 = sshll.u32 %s606_s3, 4  ;;  %s269_s5 = int_to_ptr.vmem [resolvable:$true] %s268_s5  ;;  %s271_s8 = int_to_ptr.hbm [resolvable:$true] %s270_s8 }
  0x1f   :  { %211 = vmatpush.bf16.msra.mxu0 %v340_v42  ;;  %s562_s9 = smov [#allocation10]   ;;  %s281_s2 = sshll.u32 %s607_s4, 4  ;;  %s282_s2 = int_to_ptr.hbm [resolvable:$true] %s281_s2 }
  0x20   :  { %224 = vmatpush.bf16.msra.mxu1 %v344_v43  ;;  %s279_s10 = sshll.u32 %s562_s9, 4  ;;  %s280_s10 = int_to_ptr.vmem [resolvable:$true] %s279_s10 }
  0x21   :  { %237 = vmatpush.bf16.msra.mxu2 %v348_v44 }
  0x23   :  { %212 = vmatpush.bf16.msra.mxu0 %v328_v51 }
  0x24   :  { %225 = vmatpush.bf16.msra.mxu1 %v332_v52 }
  0x25   :  { %238 = vmatpush.bf16.msra.mxu2 %v336_v53 }
  0x27   :  { %213 = vmatpush.bf16.msra.mxu0 %v316_v60 }
  0x28   :  { %226 = vmatpush.bf16.msra.mxu1 %v320_v61 }
  0x29   :  { %239 = vmatpush.bf16.msra.mxu2 %v324_v62 }
  0x2b   :  { %214 = vmatpush.bf16.msra.mxu0 %v304_v5 }
  0x2c   :  { %227 = vmatpush.bf16.msra.mxu1 %v308_v6 }
  0x2d   :  { %240 = vmatpush.bf16.msra.mxu2 %v312_v7 }
  0x2e   :  { %215 = vmatmul.bf16.vlgmr.msra.gmra.mxu0 %v46_v8 }
  0x2f   :  { %228 = vmatmul.bf16.vlgmr.msra.gmra.mxu1 %v46_v8 }
  0x30   :  { %241 = vmatmul.bf16.vlgmr.msra.gmra.mxu2 %v46_v8 }
  0xab   :  { %v216_v9 = vpop.f32.mrf.mxu0 }
  0xac   :  { %v246_v10 = vpack.c.bf16 %v216_v9, %v216_v9  ;;  %v229_v11 = vpop.f32.mrf.mxu1 }
  0xad   :  { %v248_v12 = vpack.c.bf16 %v229_v11, %v229_v11 }
  0xae   :  { %247 = vst [vmem:[#allocation7] sm:$0xf] %v246_v10 }
  0xaf   :  { %249 = vst [vmem:[#allocation8] sm:$0xf] %v248_v12  ;;  %262 = dma.vmem_to_hbm [thread:$0]  %s258_s1, 64, %s260_s29, [#allocation4]  }
  0xb0   :  { %273 = dma.vmem_to_hbm [thread:$0]  %s269_s5, 64, %s271_s8, [#allocation9]  }
  0xb3   :  { %v242_v13 = vpop.f32.mrf.mxu2  ;;  %v218_v15 = vpop.f32.mrf.mxu0 }
  0xb4   :  { %v250_v14 = vpack.c.bf16 %v242_v13, %v242_v13  ;;  %v231_v16 = vpop.f32.mrf.mxu1 }
  0xb6   :  { %251 = vst [vmem:[#allocation10] sm:$0xf] %v250_v14 }
  0xb7   :  { %284 = dma.vmem_to_hbm [thread:$0]  %s280_s10, 64, %s282_s2, [#allocation9]  }
  0xbb   :  { %v244_v17 = vpop.f32.mrf.mxu2 }
  0xbc   :  { %552 = dma.done.wait [#allocation4], 64  }
  0xbd   :  { %553 = vsyncadd [#allocation4], 4294967232 }
  0xbe   :  { %554 = dma.done.wait [#allocation9], 128  }
  0xbf   :  { %555 = vsyncadd [#allocation9], 4294967168 }
  0xc0   :  { %297 = vsyncpa [#allocation3], 1 }
  0xc1   :  { %298 = vsyncpa [#allocation6], 1 }
  0xc2   :  { %299 = vsyncpa [#allocation4], 1 }
  0xc3   :  { %300 = vsyncpa [#allocation9], 1 }

</bundles_post_ra>
